<compile_context>
chip_gen: v7x
topology: tpu7x:2x2x1
jax: 0.10.0
libtpu: 0.0.40
codegen_flags: <defaults>
</compile_context>

<pallas_src>
import functools
import math

import jax
import jax.numpy as jnp
from jax import lax
from jax.experimental import pallas as pl
from jax.experimental.pallas import tpu as pltpu


def _crf_kernel(a_ref, base_ref, sel_ref, img_ref, o_ref, *, cg_pad, w1_residual):
    # a_ref   : (S, S)       batch-invariant: -coord_diff/(2*alpha) + log(w1)
    # base_ref: (S, S)       batch-invariant: w2*exp(-coord_diff/(2*gamma)) - shift
    # sel_ref : (HW, S)      batch-invariant one-hot pixel-selection matrix
    # img_ref : (1, Ct, HW)  rows [0, cg_pad): guidance * sqrt(0.5/beta), zero padded
    #                        rows [cg_pad, Ct): clusters, zero padded
    # o_ref   : (1, S, S)
    img = img_ref[0]                                      # (Ct, HW)
    sel = sel_ref[...]                                    # (HW, S)

    # Sample gather as one MXU matmul (one-hot columns select pixels).
    dn_hw = (((1,), (0,)), ((), ()))                      # contract the HW axis
    merged = lax.dot_general(img, sel, dn_hw,
                             preferred_element_type=jnp.float32)          # (Ct, S)
    g = merged[:cg_pad]                                   # (cg_pad, S) pre-scaled guidance
    c = merged[cg_pad:]                                   # (cc_pad, S) clusters

    dn_c = (((0,), (0,)), ((), ()))                       # contract the channel axis

    # <g_i, g_j> Gram on the MXU (padded zero rows contribute nothing).
    gg = lax.dot_general(g, g, dn_c, preferred_element_type=jnp.float32)  # (S, S)

    # ||g||^2 along channels; column broadcast via one extra tiny MXU push.
    g2 = g * g
    gsq_row = jnp.sum(g2, axis=0, keepdims=True)                          # (1, S)
    gsq_col = lax.dot_general(g2, jnp.ones_like(g), dn_c,
                              preferred_element_type=jnp.float32)         # (S, S)

    # Pairwise squared feature distance, already divided by 2*beta; clamp
    # cancellation-induced negatives from the Gram trick.
    gdiff = jnp.maximum(gsq_col + gsq_row - 2.0 * gg, 0.0)                # (S, S)

    # == w1 * exp(-cd/(2*alpha) - raw_gdiff/(2*beta))   (w1, 1/(2*beta) pre-folded)
    e = jnp.exp(a_ref[...] - gdiff)
    if w1_residual != 1.0:                # only taken if log(w1) could not be folded
        e = w1_residual * e
    sim_kernel = e + base_ref[...]

    # Cluster Gram with one operand negated: output sign folded into the matmul.
    cs_neg = lax.dot_general(-c, c, dn_c, preferred_element_type=jnp.float32)  # (S, S)
    o_ref[0] = cs_neg * sim_kernel


def contrastive_crf_loss(guidance, clusters, coords,
                         alpha, beta, gamma, w1, w2, shift):
    """guidance: (N, Cg, H, W) f32; clusters: (N, Cc, H, W) f32; coords: (2, S) int32."""
    N, Cg, H, W = guidance.shape
    Cc = clusters.shape[1]
    S = coords.shape[1]
    HW = H * W

    # Pad each feature group to a full f32 sublane tile (>= 8 rows) so the merged
    # per-step block is clean (8,128) tiles and the in-kernel slices sit on tile
    # boundaries.
    cg_pad = max(8, -(-Cg // 8) * 8)
    cc_pad = max(8, -(-Cc // 8) * 8)
    Ct = cg_pad + cc_pad

    # Fold 1/(2*beta) into the guidance features; build the single merged image.
    g_scale = math.sqrt(0.5 / float(beta))
    g_flat = guidance.astype(jnp.float32).reshape(N, Cg, HW) * g_scale
    c_flat = clusters.astype(jnp.float32).reshape(N, Cc, HW)
    img = jnp.concatenate(
        [jnp.pad(g_flat, ((0, 0), (0, cg_pad - Cg), (0, 0))),
         jnp.pad(c_flat, ((0, 0), (0, cc_pad - Cc), (0, 0)))],
        axis=1,
    )                                                                      # (N, Ct, HW)

    # Batch-invariant terms: computed once, DMA'd once (constant index_maps).
    flat_idx = coords[0] * W + coords[1]                                   # (S,)
    onehot = (flat_idx[None, :]
              == jnp.arange(HW, dtype=flat_idx.dtype)[:, None]).astype(jnp.float32)  # (HW, S)
    coord_diff = jnp.sum(
        (coords[:, :, None] - coords[:, None, :]) ** 2, axis=0
    ).astype(jnp.float32)                                                  # (S, S)
    a_term = -coord_diff / (2.0 * float(alpha))
    if float(w1) > 0.0:
        a_term = a_term + math.log(float(w1))   # fold w1 into the exponent
        w1_residual = 1.0
    else:
        w1_residual = float(w1)
    base_term = (float(w2) * jnp.exp(-coord_diff / (2.0 * float(gamma)))
                 - float(shift))                                           # (S, S)

    kernel = functools.partial(_crf_kernel, cg_pad=cg_pad, w1_residual=w1_residual)

    out = pl.pallas_call(
        kernel,
        out_shape=jax.ShapeDtypeStruct((N, S, S), jnp.float32),
        grid=(N,),
        in_specs=[
            pl.BlockSpec((S, S), lambda n: (0, 0)),         # constant -> fetched once
            pl.BlockSpec((S, S), lambda n: (0, 0)),         # constant -> fetched once
            pl.BlockSpec((HW, S), lambda n: (0, 0)),        # constant -> fetched once
            pl.BlockSpec((1, Ct, HW), lambda n: (n, 0, 0)), # single per-step DMA
        ],
        out_specs=pl.BlockSpec((1, S, S), lambda n: (n, 0, 0)),
        compiler_params=pltpu.CompilerParams(dimension_semantics=("parallel",)),
    )(a_term, base_term, onehot, img)
    return out


def _reference(guidance, clusters, coords, alpha, beta, gamma, w1, w2, shift):
    sel_g = guidance[:, :, coords[0], coords[1]]
    sel_c = clusters[:, :, coords[0], coords[1]]
    cd = jnp.sum((coords[:, :, None] - coords[:, None, :]) ** 2, axis=0)[None].astype(jnp.float32)
    gdiff = jnp.sum((sel_g[:, :, :, None] - sel_g[:, :, None, :]) ** 2, axis=1)
    sim = (w1 * jnp.exp(-cd / (2 * alpha) - gdiff / (2 * beta))
           + w2 * jnp.exp(-cd / (2 * gamma)) - shift)
    cs = jnp.einsum('nka,nkb->nab', sel_c, sel_c)
    return -(cs * sim)


if __name__ == "__main__":
    # module hyperparameters (deterministic, set in-script)
    n_samples = 128
    alpha, beta, gamma = 0.5, 0.15, 0.05
    w1, w2, shift = 10.0, 3.0, 0.0

    N, Cg, Cc, H, W = 2, 4, 6, 16, 16

    key = jax.random.PRNGKey(0)
    kg, kc, kr, kcol = jax.random.split(key, 4)
    guidance = jax.random.normal(kg, (N, Cg, H, W), dtype=jnp.float32)
    clusters = jax.random.normal(kc, (N, Cc, H, W), dtype=jnp.float32)
    # TODO(synk): the torch module draws coords internally with torch.randint; the
    # sampling is hoisted here (passed in) so kernel and reference see the same coords.
    coords = jnp.concatenate(
        [jax.random.randint(kr, (1, n_samples), 0, H, dtype=jnp.int32),
         jax.random.randint(kcol, (1, n_samples), 0, W, dtype=jnp.int32)],
        axis=0,
    )

    out = contrastive_crf_loss(guidance, clusters, coords,
                               alpha, beta, gamma, w1, w2, shift)
    out = jax.block_until_ready(out)

    ref = _reference(guidance, clusters, coords, alpha, beta, gamma, w1, w2, shift)
    assert out.shape == (N, n_samples, n_samples)
    assert jnp.allclose(out, ref, rtol=1e-3, atol=1e-3), "mismatch vs JAX reference"

    print("KERNEL_OK")
</pallas_src>

<mosaic_0001>
module attributes {stable_mosaic.version = 11 : i64} {
  func.func @_crf_kernel(%arg0: i32, %arg1: memref<128x128xf32, #tpu.memory_space<vmem>>, %arg2: memref<128x128xf32, #tpu.memory_space<vmem>>, %arg3: memref<256x128xf32, #tpu.memory_space<vmem>>, %arg4: memref<1x16x256xf32, #tpu.memory_space<vmem>>, %arg5: memref<1x128x128xf32, #tpu.memory_space<vmem>>) attributes {dimension_semantics = [#tpu.dimension_semantics<parallel>], iteration_bounds = array<i64: 2>, scalar_prefetch = 0 : i64, scratch_operands = 0 : i64, tpu.core_type = #tpu.core_type<tc>, window_params = [{pipeline_mode = #tpu.pipeline_mode<synchronous>, transform_indices = @transform_0, window_bounds = array<i64: 128, 128>}, {pipeline_mode = #tpu.pipeline_mode<synchronous>, transform_indices = @transform_1, window_bounds = array<i64: 128, 128>}, {pipeline_mode = #tpu.pipeline_mode<synchronous>, transform_indices = @transform_2, window_bounds = array<i64: 256, 128>}, {transform_indices = @transform_3, window_bounds = array<i64: 1, 16, 256>}, {transform_indices = @transform_4, window_bounds = array<i64: 1, 128, 128>}]} {
    %c0 = arith.constant 0 : index
    %c0_0 = arith.constant 0 : index
    %c0_1 = arith.constant 0 : index
    %0 = vector.load %arg4[%c0, %c0_0, %c0_1] : memref<1x16x256xf32, #tpu.memory_space<vmem>>, vector<1x16x256xf32>
    %1 = vector.shape_cast %0 : vector<1x16x256xf32> to vector<16x256xf32>
    %c0_2 = arith.constant 0 : index
    %c0_3 = arith.constant 0 : index
    %2 = vector.load %arg3[%c0_2, %c0_3] : memref<256x128xf32, #tpu.memory_space<vmem>>, vector<256x128xf32>
    %cst = arith.constant dense<0.000000e+00> : vector<16x128xf32>
    %3 = tpu.matmul %1, %2, %cst {dimension_numbers = #tpu.dot_dimension_numbers<[1], [0], [0], [1], [0, 0, 1, 1], [], []>} : vector<16x256xf32>, vector<256x128xf32>, vector<16x128xf32> -> vector<16x128xf32>
    %4 = vector.extract_strided_slice %3 {offsets = [0, 0], sizes = [8, 128], strides = [1, 1]} : vector<16x128xf32> to vector<8x128xf32>
    %5 = vector.extract_strided_slice %3 {offsets = [8, 0], sizes = [8, 128], strides = [1, 1]} : vector<16x128xf32> to vector<8x128xf32>
    %cst_4 = arith.constant dense<0.000000e+00> : vector<128x128xf32>
    %6 = tpu.matmul %4, %4, %cst_4 {dimension_numbers = #tpu.dot_dimension_numbers<[0], [0], [1], [1], [0, 1, 1, 1], [], []>} : vector<8x128xf32>, vector<8x128xf32>, vector<128x128xf32> -> vector<128x128xf32>
    %7 = arith.mulf %4, %4 : vector<8x128xf32>
    %cst_5 = arith.constant dense<0.000000e+00> : vector<128xf32>
    %8 = vector.multi_reduction <add>, %7, %cst_5 [0] : vector<8x128xf32> to vector<128xf32>
    %9 = vector.shape_cast %8 : vector<128xf32> to vector<1x128xf32>
    %cst_6 = arith.constant 1.000000e+00 : f32
    %10 = vector.broadcast %cst_6 : f32 to vector<8x128xf32>
    %cst_7 = arith.constant dense<0.000000e+00> : vector<128x128xf32>
    %11 = tpu.matmul %7, %10, %cst_7 {dimension_numbers = #tpu.dot_dimension_numbers<[0], [0], [1], [1], [0, 1, 1, 1], [], []>} : vector<8x128xf32>, vector<8x128xf32>, vector<128x128xf32> -> vector<128x128xf32>
    %12 = vector.broadcast %9 : vector<1x128xf32> to vector<128x128xf32>
    %13 = arith.addf %11, %12 : vector<128x128xf32>
    %cst_8 = arith.constant 2.000000e+00 : f32
    %14 = vector.broadcast %cst_8 : f32 to vector<128x128xf32>
    %15 = arith.mulf %14, %6 : vector<128x128xf32>
    %16 = arith.subf %13, %15 : vector<128x128xf32>
    %cst_9 = arith.constant 0.000000e+00 : f32
    %17 = vector.broadcast %cst_9 : f32 to vector<128x128xf32>
    %18 = arith.maximumf %16, %17 : vector<128x128xf32>
    %c0_10 = arith.constant 0 : index
    %c0_11 = arith.constant 0 : index
    %19 = vector.load %arg1[%c0_10, %c0_11] : memref<128x128xf32, #tpu.memory_space<vmem>>, vector<128x128xf32>
    %20 = arith.subf %19, %18 : vector<128x128xf32>
    %21 = math.exp %20 : vector<128x128xf32>
    %c0_12 = arith.constant 0 : index
    %c0_13 = arith.constant 0 : index
    %22 = vector.load %arg2[%c0_12, %c0_13] : memref<128x128xf32, #tpu.memory_space<vmem>>, vector<128x128xf32>
    %23 = arith.addf %21, %22 : vector<128x128xf32>
    %cst_14 = arith.constant 0.000000e+00 : f32
    %24 = vector.broadcast %cst_14 : f32 to vector<8x128xf32>
    %25 = arith.subf %24, %5 : vector<8x128xf32>
    %cst_15 = arith.constant dense<0.000000e+00> : vector<128x128xf32>
    %26 = tpu.matmul %25, %5, %cst_15 {dimension_numbers = #tpu.dot_dimension_numbers<[0], [0], [1], [1], [0, 1, 1, 1], [], []>} : vector<8x128xf32>, vector<8x128xf32>, vector<128x128xf32> -> vector<128x128xf32>
    %27 = arith.mulf %26, %23 : vector<128x128xf32>
    %c0_16 = arith.constant 0 : index
    %c0_17 = arith.constant 0 : index
    %c0_18 = arith.constant 0 : index
    %28 = vector.load %arg5[%c0_16, %c0_17, %c0_18] : memref<1x128x128xf32, #tpu.memory_space<vmem>>, vector<1x128x128xf32>
    %29 = vector.shape_cast %28 : vector<1x128x128xf32> to vector<128x128xf32>
    %30 = vector.shape_cast %27 : vector<128x128xf32> to vector<1x128x128xf32>
    tpu.vector_store %arg5[%c0_16, %c0_17, %c0_18], %30 {strides = array<i32>} : memref<1x128x128xf32, #tpu.memory_space<vmem>>, vector<1x128x128xf32>,
    return
  }
  func.func @transform_0(%arg0: i32) -> (i32, i32) {
    %c0_i32 = arith.constant 0 : i32
    %c0_i32_0 = arith.constant 0 : i32
    %c0_i32_1 = arith.constant 0 : i32
    return %c0_i32, %c0_i32_0 : i32, i32
  }
  func.func @transform_1(%arg0: i32) -> (i32, i32) {
    %c0_i32 = arith.constant 0 : i32
    %c0_i32_0 = arith.constant 0 : i32
    %c0_i32_1 = arith.constant 0 : i32
    return %c0_i32, %c0_i32_0 : i32, i32
  }
  func.func @transform_2(%arg0: i32) -> (i32, i32) {
    %c0_i32 = arith.constant 0 : i32
    %c0_i32_0 = arith.constant 0 : i32
    %c0_i32_1 = arith.constant 0 : i32
    return %c0_i32, %c0_i32_0 : i32, i32
  }
  func.func @transform_3(%arg0: i32) -> (i32, i32, i32) {
    %c0_i32 = arith.constant 0 : i32
    %c0_i32_0 = arith.constant 0 : i32
    %c0_i32_1 = arith.constant 0 : i32
    return %arg0, %c0_i32, %c0_i32_0 : i32, i32, i32
  }
  func.func @transform_4(%arg0: i32) -> (i32, i32, i32) {
    %c0_i32 = arith.constant 0 : i32
    %c0_i32_0 = arith.constant 0 : i32
    %c0_i32_1 = arith.constant 0 : i32
    return %arg0, %c0_i32, %c0_i32_0 : i32, i32, i32
  }
}

</mosaic_0001>

<bundles_post_ra>
// kernel: tpu_custom_call.1
= control target key start
LH: loop header
LB: loop body
LE: loop exit
PB: predicated region body
PF: predicated region fallthrough
CT: control target
= control target key end

     0   :  { %9 = vsyncpa [#allocation3], 0  ;;  %s2408_s0 = inlined_call_operand.hbm [shape: f32[128,128], index: 0, kind: input, shape index: {}]   ;;  %s2409_s1 = inlined_call_operand.hbm [shape: f32[128,128], index: 1, kind: input, shape index: {}]   ;;  %s2410_s2 = inlined_call_operand.hbm [shape: f32[256,128], index: 2, kind: input, shape index: {}]   ;;  %s2411_s3 = inlined_call_operand.hbm [shape: f32[2,16,256], index: 3, kind: input, shape index: {}]   ;;  %s2412_s4 = inlined_call_operand.hbm [shape: f32[2,128,128], index: 4, kind: output, shape index: {}]  }
   0x1   :  { %10 = vsyncpa [#allocation6], 0 }
   0x2   :  { %11 = vsyncpa [#allocation9], 0 }
   0x3   :  { %13 = vsyncpa [#allocation9 + $0x1], 0 }
   0x4   :  { %14 = vsyncpa [#allocation4], 0 }
   0x5   :  { %16 = vsyncpa [#allocation4 + $0x1], 0  ;;  %s1962_s15 = smov 0   ;;  %s1964_s16 = smov 0  }
   0x6   :  { %s1966_s17 = smov 0   ;;  %s1968_s18 = smov 0  }
   0x7 LB: > { %s1983_s19 = sadd.s32 4294967295, %s1923_s18   ;;  %s1349_s20 = sadd.s32 4294967294, %s1923_s18   ;;  %s1923_s18 = sphi %s1968_s18, %s2435_s18   ;;  %s1919_s17 = sphi %s1966_s17, %s2434_s17   ;;  %s1915_s16 = sphi %s1964_s16, %s2433_s16   ;;  %s1911_s15 = sphi %s1962_s15, %s2432_s15  }
   0x8   : > { %p105_p0 = scmp.ne.s32.totalorder %s1915_s16, %s1911_s15  ;;  %p2413_p1 = scmp.eq.s32.totalorder %s1983_s19, 0 }
   0x9   : > { %p135_p3 = scmp.eq.s32.totalorder %s1349_s20, 1  ;;  %p1350_p5 = scmp.ge.s32.totalorder %s1923_s18, 1 }
   0xa   : > { %p1992_p4 = por %p2413_p1, %p105_p0  ;;  %p142_p7 = scmp.lt.s32.totalorder %s1923_s18, 3 }
   0xb   : > { %p1997_p6 = por %p135_p3, %p105_p0  ;;  %s1925_s24 = smov [#allocation5]  }
   0xc   : > { %s2416_s21 = scalar_select %p1992_p4, 1, 0 }
   0xd   : > { %s2417_s22 = scalar_select %p1997_p6, 1, 0 }
   0xe   : > { %p2002_p8 = pnand %p1350_p5, %p142_p7  ;;  %s167_s25 = sshll.u32 %s1925_s24, 4  ;;  %s2009_s25 = int_to_ptr.vmem [resolvable:$true] %s167_s25 }
   0xf   : > { %s1926_s27 = smov [#allocation2]   ;;  %s1927_s29 = smov [#allocation7]  }
  0x10   : > { %s2418_s23 = scalar_select %p2002_p8, 1, 0 }
  0x11   : > { %p1634_p10 = pneg %p2002_p8  ;;  %s154_s28 = sshll.u32 %s1926_s27, 4  ;;  %s2017_s28 = int_to_ptr.vmem [resolvable:$true] %s154_s28 }
  0x12   : > { %s2019_s30 = sshll.u32 %s1927_s29, 4  ;;  %s1735_s7 = scalar_lea.hbm %s2409_s1, 2048  ;;  %s181_s30 = int_to_ptr.vmem [resolvable:$true] %s2019_s30 }
  0x13   : > { %p2013_p11 = pnand %p1634_p10, %p2413_p1  ;;  %p1736_p12 = scmp.ne.s32.totalorder %s2409_s1, %s1735_s7 }
  0x14   : > { %p1742_p5 = scmp.lt.u32.totalorder %s1735_s7, %s2409_s1 }
  0x15   : > { %p2029_p13 = pneg %p2013_p11 }
  0x17   : > { %p1738_p0 = pnand %p2029_p13, %p1736_p12 }
  0x19   : > { %p1739_p3 = pneg %p1738_p0 }
  0x1b   : > { %p1744_p7 = pnand %p1742_p5, %p1739_p3 }
  0x1d   : > { %1747 = shalt.err (!%p1744_p7)
}
  0x1e   : > { %s1748_s13 = scalar_lea.vmem %s2009_s25, 2048  ;;  %p1756_p2 = scmp.lt.s32.totalorder %s2009_s25, %s2009_s25 }
  0x1f   : > { %p1749_p10 = scmp.ne.s32.totalorder %s2009_s25, %s1748_s13  ;;  %p1757_p6 = scmp.lt.s32.totalorder %s1748_s13, %s1748_s13 }
  0x21   : > { %p1751_p9 = pnand %p1749_p10, %p2029_p13  ;;  %p1758_p12 = por %p1757_p6, %p1756_p2 }
  0x23   : > { %p1752_p1 = pneg %p1751_p9 }
  0x25   : > { %p1759_p0 = pnand %p1758_p12, %p1752_p1 }
  0x27   : > { %1762 = shalt.err (!%p1759_p0)
}
  0x28   : > { %s1928_s14 = smov 128   ;;  %s1929_s20 = smov 8  }
  0x29   : > { %1640 = dma.hbm_to_vmem [thread:$0]  (!%p2013_p11), %s2409_s1, 2048, %s2009_s25, [#allocation6], %s1928_s14, %s1928_s14, %s1929_s20  }
  0x2a   : > { %s1763_s6 = scalar_lea.hbm %s2408_s0, 2048 }
  0x2b   : > { %p1764_p1 = scmp.ne.s32.totalorder %s2408_s0, %s1763_s6  ;;  %p1770_p9 = scmp.lt.u32.totalorder %s1763_s6, %s2408_s0 }
  0x2d   : > { %p1766_p2 = pnand %p1764_p1, %p2029_p13 }
  0x2f   : > { %p1767_p6 = pneg %p1766_p2 }
  0x31   : > { %p1772_p3 = pnand %p1770_p9, %p1767_p6 }
  0x33   : > { %1775 = shalt.err (!%p1772_p3)
}
  0x34   : > { %s1776_s25 = scalar_lea.vmem %s2017_s28, 2048  ;;  %p1784_p12 = scmp.lt.s32.totalorder %s2017_s28, %s2017_s28 }
  0x35   : > { %p1777_p5 = scmp.ne.s32.totalorder %s2017_s28, %s1776_s25  ;;  %p1785_p0 = scmp.lt.s32.totalorder %s1776_s25, %s1776_s25 }
  0x37   : > { %p1779_p7 = pnand %p1777_p5, %p2029_p13  ;;  %p1786_p1 = por %p1785_p0, %p1784_p12 }
  0x39   : > { %p1780_p10 = pneg %p1779_p7 }
  0x3b   : > { %p1787_p2 = pnand %p1786_p1, %p1780_p10 }
  0x3d   : > { %1790 = shalt.err (!%p1787_p2)
}
  0x3e   : > { %1637 = dma.hbm_to_vmem [thread:$0]  (!%p2013_p11), %s2408_s0, 2048, %s2017_s28, [#allocation3], %s1928_s14, %s1928_s14, %s1929_s20  }
  0x3f   : > { %s1791_s29 = scalar_lea.hbm %s2410_s2, 4096 }
  0x40   : > { %p1792_p6 = scmp.ne.s32.totalorder %s2410_s2, %s1791_s29  ;;  %p1798_p5 = scmp.lt.u32.totalorder %s1791_s29, %s2410_s2 }
  0x42   : > { %p1794_p9 = pnand %p1792_p6, %p2029_p13 }
  0x44   : > { %p1795_p3 = pneg %p1794_p9 }
  0x46   : > { %p1800_p7 = pnand %p1798_p5, %p1795_p3 }
  0x48   : > { %1803 = shalt.err (!%p1800_p7)
}
  0x49   : > { %s1804_s9 = scalar_lea.vmem %s181_s30, 4096  ;;  %p1812_p1 = scmp.lt.s32.totalorder %s181_s30, %s181_s30 }
  0x4a   : > { %p1805_p10 = scmp.ne.s32.totalorder %s181_s30, %s1804_s9  ;;  %p1813_p2 = scmp.lt.s32.totalorder %s1804_s9, %s1804_s9 }
  0x4c   : > { %p1807_p12 = pnand %p1805_p10, %p2029_p13  ;;  %p1814_p4 = por %p1813_p2, %p1812_p1 }
  0x4e   : > { %p1808_p0 = pneg %p1807_p12 }
  0x50   : > { %p1815_p8 = pnand %p1814_p4, %p1808_p0 }
  0x52   : > { %1818 = shalt.err (!%p1815_p8)
}
  0x53   : > { %1643 = dma.hbm_to_vmem [thread:$0]  (!%p2013_p11), %s2410_s2, 4096, %s181_s30, [#allocation6], %s1928_s14, %s1928_s14, %s1929_s20  }
  0x54   : > { %s2102_s10 = sadd.s32 1, %s1923_s18   ;;  %s92_s25 = sadd.s32 1, %s1919_s17 }
  0x55   : > { %s89_s26 = ssub.s32 %s1923_s18, %s2102_s10  ;;  %p99_p8 = scmp.ne.s32.totalorder %s1919_s17, %s1915_s16 }
  0x56   : > { %p90_p4 = scmp.eq.s32.totalorder %s89_s26, 0  ;;  %p100_p13 = scmp.eq.s32.totalorder %s1923_s18, 0 }
  0x57   : > { %p1655_p6 = scmp.lt.s32.totalorder %s1923_s18, 2  ;;  %p2421_p3 = scmp.eq.s32.totalorder %s1983_s19, 1 }
  0x58   : > { %s2112_s12 = scalar_select %p90_p4, %s1919_s17, %s92_s25  }
  0x59   : > { %p101_p9 = por %p100_p13, %p99_p8  ;;  %p2116_p5 = por %p2421_p3, %p99_p8 }
  0x5a   : > { %s194_s24 = sand.u32 1, %s1919_s17   ;;  %s1417_s27 = sshll.u32 %s1923_s18, 9 }
  0x5b   : > { %s1355_s30 = sshll.u32 %s194_s24, 5  ;;  %s2125_s29 = scalar_lea.hbm %s2411_s3, %s1417_s27 }
  0x5c   : > { %s198_s5 = scalar_lea.vmem [#allocation8], %s1355_s30  ;;  %p2127_p11 = pnand %p1655_p6, %p101_p9 }
  0x5d   : > { %s205_s6 = sshll.u32 %s198_s5, 4  ;;  %s2133_s8 = scalar_lea.sflag [#allocation9], %s194_s24  ;;  %s2131_s6 = int_to_ptr.vmem [resolvable:$true] %s205_s6 }
  0x5e   : > { %s1819_s9 = scalar_lea.hbm %s2125_s29, 512  ;;  %p1821_p10 = pneg %p2127_p11 }
  0x5f   : > { %p1820_p7 = scmp.ne.s32.totalorder %s2125_s29, %s1819_s9  ;;  %s1824_s26 = scalar_lea.hbm %s2411_s3, 1024 }
  0x60   : > { %p1825_p1 = scmp.lt.u32.totalorder %s2125_s29, %s2411_s3  ;;  %p1826_p2 = scmp.lt.u32.totalorder %s1824_s26, %s1819_s9 }
  0x61   : > { %p1822_p12 = pnand %p1821_p10, %p1820_p7  ;;  %p1828_p8 = scmp.lt.u32.totalorder %s1819_s9, %s2125_s29 }
  0x62   : > { %p1827_p4 = por %p1826_p2, %p1825_p1 }
  0x63   : > { %p1823_p0 = pneg %p1822_p12 }
  0x64   : > { %p1829_p13 = por %p1828_p8, %p1827_p4 }
  0x66   : > { %p1830_p6 = pnand %p1829_p13, %p1823_p0 }
  0x68   : > { %1833 = shalt.err (!%p1830_p6)
}
  0x69   : > { %s1834_s24 = scalar_lea.vmem %s2131_s6, 512  ;;  %s1930_s30 = smov [#allocation8]  }
  0x6a   : > { %p1835_p9 = scmp.ne.s32.totalorder %s2131_s6, %s1834_s24  ;;  %s1839_s14 = sshll.u32 %s1930_s30, 4  ;;  %s1840_s14 = int_to_ptr.vmem [resolvable:$false] %s1839_s14 }
  0x6b   : > { %s1841_s20 = scalar_lea.vmem %s1840_s14, 1024  ;;  %p1842_p12 = scmp.lt.s32.totalorder %s2131_s6, %s1840_s14 }
  0x6c   : > { %p1837_p3 = pnand %p1835_p9, %p1821_p10  ;;  %p1843_p1 = scmp.lt.s32.totalorder %s1841_s20, %s1834_s24 }
  0x6e   : > { %p1838_p7 = pneg %p1837_p3  ;;  %p1844_p2 = por %p1843_p1, %p1842_p12 }
  0x70   : > { %p1845_p4 = pnand %p1844_p2, %p1838_p7 }
  0x72   : > { %1848 = shalt.err (!%p1845_p4)
}
  0x73   : > { %s1931_s5 = smov 256   ;;  %s1932_s9 = smov 16  }
  0x74   : > { %1647 = dma.hbm_to_vmem [thread:$0]  (!%p2127_p11), %s2125_s29, 512, %s2131_s6, %s2133_s8, %s1931_s5, %s1931_s5, %s1932_s9  }
  0x75   : > { %p2424_p10 = scmp.ne.s32.totalorder %s2418_s23, 0 }
  0x76   : > { %p2425_p0 = scmp.eq.s32.totalorder (!%p2424_p10), %s1983_s19, 0 }
  0x77   : > { %217 = sbr.rel (%p2424_p10) target bundleno = 890 (0x37a), region = 36 }
  0x7e   : > { %1894 = dma.done.wait (%p2425_p0), [#allocation3], 2048   ;;  %p2426_p8 = pmov %p2425_p0 }
  0x7f   : > { %p2427_p13 = pmov %p2425_p0 }
  0x80   : > { %1896 = vsyncadd (%p2426_p8), [#allocation3], 4294965248 }
  0x81   : > { %1898 = dma.done.wait (%p2427_p13), [#allocation6], 6144   ;;  %p2428_p6 = pmov %p2425_p0 }
  0x82   : > { %s2172_s28 = sand.u32 1, %s1915_s16   ;;  %p2429_p11 = scmp.ne.s32.totalorder %s2416_s21, 0 }
  0x83   : > { %1900 = vsyncadd (%p2428_p6), [#allocation6], 4294961152  ;;  %s1362_s23 = sshll.u32 %s2172_s28, 5  ;;  %s232_s29 = scalar_lea.sflag [#allocation9], %s2172_s28 }
  0x84   : > { %s2176_s6 = scalar_lea.vmem [#allocation8], %s1362_s23 }
  0x85   : > { %1902 = dma.done.wait (%p2429_p11), %s232_s29, 512  }
  0x86   : > { %1904 = vsyncadd (%p2429_p11), %s232_s29, 4294966784  ;;  %v280_v0 = vld [vmem:[#allocation7 + $0x80] sm:$0xff]  ;;  %v281_v1 = vld [vmem:[#allocation7 + $0x88] sm:$0xff]  ;;  %v1933_v60 = vmov 1.0   ;;  %vm403_vm0 = vcmask 64512   ;;  %s1363_s21 = sshll.u32 %s2172_s28, 7 }
  0x87   : > { %v264_v2 = vld [vmem:[#allocation7] sm:$0xff]  ;;  %v1586_v3 = vpack.c.bf16 %v281_v1, %v280_v0  ;;  %v265_v4 = vld [vmem:[#allocation7 + $0x8] sm:$0xff]  ;;  %v282_v5 = vld [vmem:[#allocation7 + $0x90] sm:$0xff]  ;;  %s2308_s7 = scalar_lea.vmem [#allocation10], %s1363_s21  ;;  %s1418_s8 = sshll.u32 %s1983_s19, 11 }
  0x88   : > { %v283_v6 = vld [vmem:[#allocation7 + $0x98] sm:$0xff]  ;;  %v1588_v7 = vpack.c.bf16 %v265_v4, %v264_v2  ;;  %v266_v9 = vld [vmem:[#allocation7 + $0x10] sm:$0xff]  ;;  %v284_v11 = vld [vmem:[#allocation7 + $0xa0] sm:$0xff]  ;;  %s1245_s11 = sshll.u32 %s2308_s7, 4  ;;  %s2359_s27 = scalar_lea.hbm %s2412_s4, %s1418_s8  ;;  %s2361_s11 = int_to_ptr.vmem [resolvable:$true] %s1245_s11 }
  0x89   : > { %v1590_v8 = vpack.c.bf16 %v283_v6, %v282_v5  ;;  %v267_v10 = vld [vmem:[#allocation7 + $0x18] sm:$0xff]  ;;  %1587 = vmatprep.subr.bf16.mxu0 %v1586_v3  ;;  %v285_v12 = vld [vmem:[#allocation7 + $0xa8] sm:$0xff]  ;;  %v268_v15 = vld [vmem:[#allocation7 + $0x20] sm:$0xff]  ;;  %s1232_s19 = scalar_lea.sflag [#allocation4], %s2172_s28  ;;  %s1849_s24 = scalar_lea.vmem %s2361_s11, 2048 }
  0x8a   : > { %1589 = vmatpush3.bf16.msra.mxu0 %v1588_v7  ;;  %v1592_v13 = vpack.c.bf16 %v267_v10, %v266_v9  ;;  %v1594_v14 = vpack.c.bf16 %v285_v12, %v284_v11  ;;  %v269_v16 = vld [vmem:[#allocation7 + $0x28] sm:$0xff]  ;;  %v286_v17 = vld [vmem:[#allocation7 + $0xb0] sm:$0xff]  ;;  %v287_v18 = vld [vmem:[#allocation7 + $0xb8] sm:$0xff]  ;;  %p1850_p9 = scmp.ne.s32.totalorder %s2361_s11, %s1849_s24  ;;  %s1934_s30 = smov [#allocation10]  }
  0x8b   : > { %1591 = vmatprep.subr.bf16.mxu0 %v1590_v8  ;;  %v1596_v19 = vpack.c.bf16 %v269_v16, %v268_v15  ;;  %v1598_v20 = vpack.c.bf16 %v287_v18, %v286_v17  ;;  %v270_v21 = vld [vmem:[#allocation7 + $0x30] sm:$0xff]  ;;  %v271_v22 = vld [vmem:[#allocation7 + $0x38] sm:$0xff]  ;;  %v288_v23 = vld [vmem:[#allocation7 + $0xc0] sm:$0xff]  ;;  %s1853_s14 = sshll.u32 %s1934_s30, 4  ;;  %s1854_s14 = int_to_ptr.vmem [resolvable:$false] %s1853_s14 }
  0x8c   : > { %v289_v24 = vld [vmem:[#allocation7 + $0xc8] sm:$0xff]  ;;  %v1600_v26 = vpack.c.bf16 %v271_v22, %v270_v21  ;;  %v272_v28 = vld [vmem:[#allocation7 + $0x40] sm:$0xff]  ;;  %v290_v30 = vld [vmem:[#allocation7 + $0xd0] sm:$0xff]  ;;  %p1851_p3 = pnand %p1850_p9, %p2116_p5  ;;  %s1855_s20 = scalar_lea.vmem %s1854_s14, 4096 }
  0x8d   : > { %v261_v25 = vld [vmem:[%s2176_s6 + $0x8] sm:$0xff]  ;;  %v1602_v27 = vpack.c.bf16 %v289_v24, %v288_v23  ;;  %v291_v31 = vld [vmem:[#allocation7 + $0xd8] sm:$0xff]  ;;  %v274_v34 = vld [vmem:[#allocation7 + $0x50] sm:$0xff]  ;;  %p1856_p12 = scmp.lt.s32.totalorder %s2361_s11, %s1854_s14  ;;  %p1857_p1 = scmp.lt.s32.totalorder %s1855_s20, %s1849_s24 }
  0x8e   : > { %1593 = vmatpush3.bf16.msra.mxu0 %v1592_v13  ;;  %360 = vmatprep.mubr.f32.mxu0 %v261_v25  ;;  %v273_v29 = vld [vmem:[#allocation7 + $0x48] sm:$0xff]  ;;  %v1606_v33 = vpack.c.bf16 %v291_v31, %v290_v30  ;;  %v275_v35 = vld [vmem:[#allocation7 + $0x58] sm:$0xff]  ;;  %v292_v36 = vld [vmem:[#allocation7 + $0xe0] sm:$0xff]  ;;  %p1852_p7 = pneg %p1851_p3 }
  0x8f   : > { %1595 = vmatprep.subr.bf16.mxu0 %v1594_v14  ;;  %v1604_v32 = vpack.c.bf16 %v273_v29, %v272_v28  ;;  %v293_v37 = vld [vmem:[#allocation7 + $0xe8] sm:$0xff]  ;;  %v1608_v38 = vpack.c.bf16 %v275_v35, %v274_v34  ;;  %v276_v40 = vld [vmem:[#allocation7 + $0x60] sm:$0xff]  ;;  %v294_v42 = vld [vmem:[#allocation7 + $0xf0] sm:$0xff]  ;;  %p1858_p2 = por %p1857_p1, %p1856_p12 }
  0x90   : > { %v1610_v39 = vpack.c.bf16 %v293_v37, %v292_v36  ;;  %v277_v41 = vld [vmem:[#allocation7 + $0x68] sm:$0xff]  ;;  %v295_v43 = vld [vmem:[#allocation7 + $0xf8] sm:$0xff]  ;;  %v278_v46 = vld [vmem:[#allocation7 + $0x70] sm:$0xff] }
  0x91   : > { %v1612_v44 = vpack.c.bf16 %v277_v41, %v276_v40  ;;  %v1614_v45 = vpack.c.bf16 %v295_v43, %v294_v42  ;;  %v279_v47 = vld [vmem:[#allocation7 + $0x78] sm:$0xff]  ;;  %v260_v49 = vld [vmem:[%s2176_s6] sm:$0xff]  ;;  %v262_v51 = vld [vmem:[%s2176_s6 + $0x10] sm:$0xff]  ;;  %p1859_p4 = pnand %p1858_p2, %p1852_p7 }
  0x92   : > { %1597 = vmatpush3.bf16.msra.mxu0 %v1596_v19  ;;  %v1616_v48 = vpack.c.bf16 %v279_v47, %v278_v46  ;;  %v263_v50 = vld [vmem:[%s2176_s6 + $0x18] sm:$0xff] }
  0x93   : > { %1599 = vmatprep.subr.bf16.mxu0 %v1598_v20 }
  0x96   : > { %1601 = vmatpush3.bf16.msra.mxu0 %v1600_v26 }
  0x97   : > { %1603 = vmatprep.subr.bf16.mxu0 %v1602_v27 }
  0x9a   : > { %1605 = vmatpush3.bf16.msra.mxu0 %v1604_v32 }
  0x9b   : > { %1607 = vmatprep.subr.bf16.mxu0 %v1606_v33 }
  0x9e   : > { %1609 = vmatpush3.bf16.msra.mxu0 %v1608_v38 }
  0x9f   : > { %1611 = vmatprep.subr.bf16.mxu0 %v1610_v39 }
  0xa2   : > { %1613 = vmatpush3.bf16.msra.mxu0 %v1612_v44 }
  0xa3   : > { %1615 = vmatprep.subr.bf16.mxu0 %v1614_v45 }
  0xa6   : > { %1617 = vmatpush3.bf16.msra.mxu0 %v1616_v48 }
  0xa9   : > { %361 = vmatmul.mubr.f32.vlgmr.msra.gmra.mrb[0].mxu0 %v260_v49 }
  0xaa   : > { %365 = vmatprep.mubr.f32.mxu0 %v263_v50 }
  0xad   : > { %366 = vmatmul.mubr.f32.gmra.mrb[2].mxu0 %v262_v51 }
 0x17c   : > { %v1451_v52 = vpop.f32.mrb[0].mxu0 }
 0x17d   : > { %v1452_v53 = vpop.f32.mrb[1].mxu0 }
 0x17e   : > { %v1453_v54 = vadd.f32 %v1452_v53, %v1451_v52 }
 0x180   : > { %371 = vxpose.xlu0.b32.start.end [1/1] (short) %v1453_v54, 128  ;;  %1508 = vmatprep.subr.mxu1 %v1453_v54  ;;  %v1454_v55 = vpop.f32.mrb[2].mxu0  ;;  %v2186_v59 = vmul.f32 %v1453_v54, %v1453_v54 }
 0x181   : > { %1509 = vmatpush3.msra.mxu1 %v1453_v54  ;;  %v1455_v56 = vpop.f32.mrb[3].mxu0 }
 0x182   : > { %v1456_v57 = vadd.f32 %v1455_v56, %v1454_v55  ;;  %1534 = vmatprep.subr.mxu1 %v1933_v60 }
 0x184   : > { %1560 = vmatprep.subr.mxu0 %v1456_v57  ;;  %v973_v58 = vsub.f32 0.0, %v1456_v57 }
 0x185   : > { %1561 = vmatpush3.msra.mxu0 %v1456_v57 }
 0x186   : > { %974 = vxpose.xlu1.b32.start.end [1/1] (short) %v973_v58, 128 }
 0x1bd   : > { %604 = vxpose.xlu0.b32.start.end [1/1] (short) %v2186_v59, 128 }
 0x200   : > { %v387_v61 = vpop.trf.xlu0 }
 0x201   : > { %1510 = vmatprep.mubr.msk.f32.mxu1 %vm403_vm0, %v387_v61 }
 0x204   : > { %v388_v62 = vpop.trf.xlu0 }
 0x205   : > { %1511 = vmatmul.mubr.msk.f32.vlgmr.msra.gmra.mrb[0].mxu1 %vm403_vm0, %v388_v62 }
 0x206   : > { %1535 = vmatpush3.msra.mxu1 %v1933_v60  ;;  %v990_v63 = vpop.trf.xlu1 }
 0x207   : > { %1562 = vmatprep.mubr.msk.f32.mxu0 %vm403_vm0, %v990_v63 }
 0x208   : > { %v389_v0 = vpop.trf.xlu0 }
 0x209   : > { %1513 = vmatprep.mubr.msk.f32.mxu1 %vm403_vm0, %v389_v0 }
 0x20a   : > { %v991_v1 = vpop.trf.xlu1 }
 0x20b   : > { %1563 = vmatmul.mubr.msk.f32.vlgmr.msra.gmra.mrb[4].mxu0 %vm403_vm0, %v991_v1 }
 0x20c   : > { %v390_v2 = vpop.trf.xlu0 }
 0x20d   : > { %1514 = vmatmul.mubr.msk.f32.gmra.mrb[2].mxu1 %vm403_vm0, %v390_v2 }
 0x20e   : > { %v992_v3 = vpop.trf.xlu1 }
 0x20f   : > { %1565 = vmatprep.mubr.msk.f32.mxu0 %vm403_vm0, %v992_v3 }
 0x210   : > { %v391_v4 = vpop.trf.xlu0 }
 0x211   : > { %1516 = vmatprep.mubr.msk.f32.mxu1 %vm403_vm0, %v391_v4  ;;  %v598_v4 = vrot.slane %v2186_v59, 4 }
 0x212   : > { %v993_v5 = vpop.trf.xlu1 }
 0x213   : > { %1566 = vmatmul.mubr.msk.f32.gmra.mrb[6].mxu0 %vm403_vm0, %v993_v5 }
 0x214   : > { %v392_v6 = vpop.trf.xlu0 }
 0x215   : > { %1517 = vmatmul.mubr.msk.f32.gmra.mrb[4].mxu1 %vm403_vm0, %v392_v6  ;;  %v599_v6 = vadd.f32 %v598_v4, %v2186_v59 }
 0x216   : > { %v994_v7 = vpop.trf.xlu1 }
 0x217   : > { %1568 = vmatprep.mubr.msk.f32.mxu0 %vm403_vm0, %v994_v7 }
 0x218   : > { %v393_v8 = vpop.trf.xlu0 }
 0x219   : > { %1519 = vmatprep.mubr.msk.f32.mxu1 %vm403_vm0, %v393_v8 }
 0x21a   : > { %v995_v9 = vpop.trf.xlu1 }
 0x21b   : > { %1569 = vmatmul.mubr.msk.f32.gmra.mrb[8].mxu0 %vm403_vm0, %v995_v9 }
 0x21c   : > { %v394_v10 = vpop.trf.xlu0 }
 0x21d   : > { %1520 = vmatmul.mubr.msk.f32.gmra.mrb[6].mxu1 %vm403_vm0, %v394_v10  ;;  %v600_v10 = vrot.slane %v599_v6, 2 }
 0x21e   : > { %v996_v11 = vpop.trf.xlu1 }
 0x21f   : > { %1571 = vmatprep.mubr.msk.f32.mxu0 %vm403_vm0, %v996_v11 }
 0x220   : > { %v395_v12 = vpop.trf.xlu0 }
 0x221   : > { %1522 = vmatprep.mubr.msk.f32.mxu1 %vm403_vm0, %v395_v12  ;;  %v601_v12 = vadd.f32 %v600_v10, %v599_v6 }
 0x222   : > { %v997_v13 = vpop.trf.xlu1 }
 0x223   : > { %1572 = vmatmul.mubr.msk.f32.gmra.mrb[10].mxu0 %vm403_vm0, %v997_v13 }
 0x224   : > { %v396_v14 = vpop.trf.xlu0 }
 0x225   : > { %1523 = vmatmul.mubr.msk.f32.gmra.mrb[8].mxu1 %vm403_vm0, %v396_v14 }
 0x226   : > { %v998_v15 = vpop.trf.xlu1 }
 0x227   : > { %1574 = vmatprep.mubr.msk.f32.mxu0 %vm403_vm0, %v998_v15 }
 0x228   : > { %v397_v16 = vpop.trf.xlu0 }
 0x229   : > { %1525 = vmatprep.mubr.msk.f32.mxu1 %vm403_vm0, %v397_v16  ;;  %v602_v16 = vrot.slane %v601_v12, 1 }
 0x22a   : > { %v999_v17 = vpop.trf.xlu1 }
 0x22b   : > { %1575 = vmatmul.mubr.msk.f32.gmra.mrb[12].mxu0 %vm403_vm0, %v999_v17  ;;  %v2291_v59 = vadd.f32 %v602_v16, %v601_v12 }
 0x22c   : > { %v398_v18 = vpop.trf.xlu0 }
 0x22d   : > { %1526 = vmatmul.mubr.msk.f32.gmra.mrb[10].mxu1 %vm403_vm0, %v398_v18 }
 0x22e   : > { %v1000_v19 = vpop.trf.xlu1 }
 0x22f   : > { %1577 = vmatprep.mubr.msk.f32.mxu0 %vm403_vm0, %v1000_v19 }
 0x230   : > { %v399_v20 = vpop.trf.xlu0 }
 0x231   : > { %1528 = vmatprep.mubr.msk.f32.mxu1 %vm403_vm0, %v399_v20 }
 0x232   : > { %v1001_v21 = vpop.trf.xlu1 }
 0x233   : > { %1578 = vmatmul.mubr.msk.f32.gmra.mrb[14].mxu0 %vm403_vm0, %v1001_v21 }
 0x234   : > { %v400_v22 = vpop.trf.xlu0 }
 0x235   : > { %1529 = vmatmul.mubr.msk.f32.gmra.mrb[12].mxu1 %vm403_vm0, %v400_v22 }
 0x236   : > { %v1002_v23 = vpop.trf.xlu1 }
 0x237   : > { %1580 = vmatprep.mubr.msk.f32.mxu0 %vm403_vm0, %v1002_v23 }
 0x238   : > { %v401_v24 = vpop.trf.xlu0 }
 0x239   : > { %1531 = vmatprep.mubr.msk.f32.mxu1 %vm403_vm0, %v401_v24 }
 0x23a   : > { %v1003_v25 = vpop.trf.xlu1 }
 0x23b   : > { %1581 = vmatmul.mubr.msk.f32.gmra.mrb[16].mxu0 %vm403_vm0, %v1003_v25 }
 0x23c   : > { %v402_v26 = vpop.trf.xlu0 }
 0x23d   : > { %1532 = vmatmul.mubr.msk.f32.gmra.mrb[14].mxu1 %vm403_vm0, %v402_v26  ;;  %v878_v26 = vld [vmem:[#allocation2 + $0x8] sm:$0xff] }
 0x23e   : > { %v1004_v27 = vpop.trf.xlu1 }
 0x23f   : > { %1583 = vmatprep.mubr.msk.f32.mxu0 %vm403_vm0, %v1004_v27 }
 0x240   : > { %v620_v28 = vpop.trf.xlu0 }
 0x241   : > { %1536 = vmatprep.mubr.msk.f32.mxu1 %vm403_vm0, %v620_v28 }
 0x242   : > { %v1005_v29 = vpop.trf.xlu1 }
 0x243   : > { %1584 = vmatmul.mubr.msk.f32.gmra.mrb[18].mxu0 %vm403_vm0, %v1005_v29  ;;  %v877_v29 = vld [vmem:[#allocation2] sm:$0xff] }
 0x244   : > { %v621_v30 = vpop.trf.xlu0 }
 0x245   : > { %1537 = vmatmul.mubr.msk.f32.vlgmr.msra.gmra.mrb[16].mxu1 %vm403_vm0, %v621_v30 }
 0x248   : > { %v622_v31 = vpop.trf.xlu0 }
 0x249   : > { %1539 = vmatprep.mubr.msk.f32.mxu1 %vm403_vm0, %v622_v31 }
 0x24c   : > { %v623_v32 = vpop.trf.xlu0 }
 0x24d   : > { %1540 = vmatmul.mubr.msk.f32.gmra.mrb[18].mxu1 %vm403_vm0, %v623_v32 }
 0x250   : > { %v624_v33 = vpop.trf.xlu0 }
 0x251   : > { %1542 = vmatprep.mubr.msk.f32.mxu1 %vm403_vm0, %v624_v33 }
 0x254   : > { %v625_v34 = vpop.trf.xlu0 }
 0x255   : > { %1543 = vmatmul.mubr.msk.f32.gmra.mrb[20].mxu1 %vm403_vm0, %v625_v34 }
 0x258   : > { %v626_v35 = vpop.trf.xlu0 }
 0x259   : > { %1545 = vmatprep.mubr.msk.f32.mxu1 %vm403_vm0, %v626_v35 }
 0x25c   : > { %v627_v36 = vpop.trf.xlu0 }
 0x25d   : > { %1546 = vmatmul.mubr.msk.f32.gmra.mrb[22].mxu1 %vm403_vm0, %v627_v36 }
 0x260   : > { %v628_v37 = vpop.trf.xlu0 }
 0x261   : > { %1548 = vmatprep.mubr.msk.f32.mxu1 %vm403_vm0, %v628_v37 }
 0x264   : > { %v629_v38 = vpop.trf.xlu0 }
 0x265   : > { %1549 = vmatmul.mubr.msk.f32.gmra.mrb[24].mxu1 %vm403_vm0, %v629_v38 }
 0x268   : > { %v630_v39 = vpop.trf.xlu0 }
 0x269   : > { %1551 = vmatprep.mubr.msk.f32.mxu1 %vm403_vm0, %v630_v39 }
 0x26c   : > { %v631_v40 = vpop.trf.xlu0 }
 0x26d   : > { %1552 = vmatmul.mubr.msk.f32.gmra.mrb[26].mxu1 %vm403_vm0, %v631_v40 }
 0x270   : > { %v632_v41 = vpop.trf.xlu0 }
 0x271   : > { %1554 = vmatprep.mubr.msk.f32.mxu1 %vm403_vm0, %v632_v41 }
 0x274   : > { %v633_v42 = vpop.trf.xlu0 }
 0x275   : > { %1555 = vmatmul.mubr.msk.f32.gmra.mrb[28].mxu1 %vm403_vm0, %v633_v42  ;;  %v880_v42 = vld [vmem:[#allocation2 + $0x18] sm:$0xff] }
 0x278   : > { %v634_v43 = vpop.trf.xlu0 }
 0x279   : > { %1557 = vmatprep.mubr.msk.f32.mxu1 %vm403_vm0, %v634_v43 }
 0x27c   : > { %v635_v44 = vpop.trf.xlu0 }
 0x27d   : > { %1558 = vmatmul.mubr.msk.f32.gmra.mrb[30].mxu1 %vm403_vm0, %v635_v44 }
 0x2d8   : > { %v1512_v45 = vpop.f32.mrb[0].mxu1 }
 0x2d9   : > { %v518_v46 = vpop.f32.mrb[1].mxu1  ;;  %v830_v20 = vmul.f32 2.0, %v1512_v45  ;;  %v879_v45 = vld [vmem:[#allocation2 + $0x10] sm:$0xff] }
 0x2da   : > { %v829_v23 = vmul.f32 2.0, %v518_v46 }
 0x2de   : > { %v2237_v47 = vpop.f32.mrb[4].mxu0 }
 0x2df   : > { %v2239_v48 = vpop.f32.mrb[5].mxu0 }
 0x2e0   : > { %v1515_v49 = vpop.f32.mrb[2].mxu1 }
 0x2e1   : > { %v528_v50 = vpop.f32.mrb[3].mxu1  ;;  %v832_v34 = vmul.f32 2.0, %v1515_v49 }
 0x2e2   : > { %v831_v38 = vmul.f32 2.0, %v528_v50 }
 0x2e6   : > { %v2241_v51 = vpop.f32.mrb[6].mxu0 }
 0x2e7   : > { %v2243_v52 = vpop.f32.mrb[7].mxu0 }
 0x2e8   : > { %v1518_v53 = vpop.f32.mrb[4].mxu1 }
 0x2e9   : > { %v2245_v54 = vpop.f32.mrb[5].mxu1  ;;  %v834_v10 = vmul.f32 2.0, %v1518_v53  ;;  %v881_v53 = vld [vmem:[#allocation2 + $0x20] sm:$0xff] }
 0x2ee   : > { %v2247_v55 = vpop.f32.mrb[8].mxu0 }
 0x2ef   : > { %v2249_v56 = vpop.f32.mrb[9].mxu0 }
 0x2f0   : > { %v2251_v57 = vpop.f32.mrb[6].mxu1 }
 0x2f1   : > { %v2253_v58 = vpop.f32.mrb[7].mxu1 }
 0x2f6   : > { %v2255_v60 = vpop.f32.mrb[10].mxu0 }
 0x2f7   : > { %v2257_v61 = vpop.f32.mrb[11].mxu0 }
 0x2f8   : > { %v2259_v62 = vpop.f32.mrb[8].mxu1 }
 0x2f9   : > { %v2261_v63 = vpop.f32.mrb[9].mxu1 }
 0x2fe   : > { %v2263_v0 = vpop.f32.mrb[12].mxu0 }
 0x2ff   : > { %v2265_v1 = vpop.f32.mrb[13].mxu0 }
 0x300   : > { %v2267_v2 = vpop.f32.mrb[10].mxu1 }
 0x301   : > { %v2269_v3 = vpop.f32.mrb[11].mxu1 }
 0x306   : > { %v2272_v5 = vpop.f32.mrb[14].mxu0 }
 0x307   : > { %v2275_v7 = vpop.f32.mrb[15].mxu0 }
 0x308   : > { %v2277_v8 = vpop.f32.mrb[12].mxu1 }
 0x309   : > { %v2279_v9 = vpop.f32.mrb[13].mxu1 }
 0x30e   : > { %v2281_v11 = vpop.f32.mrb[16].mxu0 }
 0x30f   : > { %v2283_v13 = vpop.f32.mrb[17].mxu0 }
 0x310   : > { %v2285_v14 = vpop.f32.mrb[14].mxu1 }
 0x311   : > { %v2287_v15 = vpop.f32.mrb[15].mxu1 }
 0x316   : > { %v2289_v17 = vpop.f32.mrb[18].mxu0 }
 0x317   : > { %v2293_v18 = vpop.f32.mrb[19].mxu0 }
 0x318   : > { %v1538_v19 = vpop.f32.mrb[16].mxu1 }
 0x319   : > { %v756_v21 = vadd.f32 %v1538_v19, %v2291_v59  ;;  %v750_v22 = vpop.f32.mrb[17].mxu1  ;;  %v833_v19 = vmul.f32 2.0, %v2245_v54 }
 0x31a   : > { %v751_v24 = vadd.f32 %v750_v22, %v2291_v59 }
 0x31b   : > { %v846_v25 = vsub.f32 %v756_v21, %v830_v20 }
 0x31c   : > { %v845_v27 = vsub.f32 %v751_v24, %v829_v23  ;;  %v942_v23 = vld [vmem:[#allocation5 + $0x8] sm:$0xff] }
 0x31d   : > { %v862_v28 = vmax.f32 %v846_v25, 0.0  ;;  %v882_v24 = vld [vmem:[#allocation2 + $0x28] sm:$0xff] }
 0x31e   : > { %v861_v30 = vmax.f32 %v845_v27, 0.0 }
 0x31f   : > { %v894_v31 = vsub.f32 %v878_v26, %v862_v28  ;;  %v941_v26 = vld [vmem:[#allocation5] sm:$0xff] }
 0x320   : > { %v893_v32 = vsub.f32 %v877_v29, %v861_v30  ;;  %v1541_v33 = vpop.f32.mrb[18].mxu1 }
 0x321   : > { %v911_v35 = vmul.f32 1.442695, %v894_v31  ;;  %v766_v36 = vadd.f32 %v1541_v33, %v2291_v59  ;;  %v760_v37 = vpop.f32.mrb[19].mxu1 }
 0x322   : > { %v909_v39 = vmul.f32 1.442695, %v893_v32  ;;  %v761_v40 = vadd.f32 %v760_v37, %v2291_v59 }
 0x323   : > { %1703 = vpow2.f32 %v911_v35  ;;  %v848_v41 = vsub.f32 %v766_v36, %v832_v34  ;;  %v836_v36 = vmul.f32 2.0, %v2251_v57  ;;  %v944_v57 = vld [vmem:[#allocation5 + $0x18] sm:$0xff] }
 0x324   : > { %1705 = vpow2.f32 %v909_v39  ;;  %v847_v43 = vsub.f32 %v761_v40, %v831_v38 }
 0x325   : > { %v864_v44 = vmax.f32 %v848_v41, 0.0  ;;  %v835_v41 = vmul.f32 2.0, %v2253_v58 }
 0x326   : > { %v863_v46 = vmax.f32 %v847_v43, 0.0 }
 0x327   : > { %v896_v4 = vsub.f32 %v880_v42, %v864_v44  ;;  %v884_v44 = vld [vmem:[#allocation2 + $0x38] sm:$0xff] }
 0x328   : > { %v895_v6 = vsub.f32 %v879_v45, %v863_v46  ;;  %v1544_v49 = vpop.f32.mrb[20].mxu1  ;;  %v943_v45 = vld [vmem:[#allocation5 + $0x10] sm:$0xff] }
 0x329   : > { %v915_v12 = vmul.f32 1.442695, %v896_v4  ;;  %v776_v16 = vadd.f32 %v1544_v49, %v2291_v59  ;;  %v770_v50 = vpop.f32.mrb[21].mxu1 }
 0x32a   : > { %v913_v20 = vmul.f32 1.442695, %v895_v6  ;;  %v771_v21 = vadd.f32 %v770_v50, %v2291_v59  ;;  %v883_v6 = vld [vmem:[#allocation2 + $0x30] sm:$0xff] }
 0x32b   : > { %1707 = vpow2.f32 %v915_v12  ;;  %v850_v22 = vsub.f32 %v776_v16, %v834_v10 }
 0x32c   : > { %1709 = vpow2.f32 %v913_v20  ;;  %v849_v25 = vsub.f32 %v771_v21, %v833_v19  ;;  %v838_v21 = vmul.f32 2.0, %v2259_v62  ;;  %v945_v62 = vld [vmem:[#allocation5 + $0x20] sm:$0xff] }
 0x32d   : > { %v1704_v27 = vpop.eup %1703  ;;  %v866_v28 = vmax.f32 %v850_v22, 0.0 }
 0x32e   : > { %v1706_v29 = vpop.eup %1705  ;;  %v865_v30 = vmax.f32 %v849_v25, 0.0  ;;  %v958_v31 = vadd.f32 %v1704_v27, %v942_v23 }
 0x32f   : > { %v898_v32 = vsub.f32 %v882_v24, %v866_v28  ;;  %v957_v33 = vadd.f32 %v1706_v29, %v941_v26  ;;  %v837_v26 = vmul.f32 2.0, %v2261_v63  ;;  %v946_v29 = vld [vmem:[#allocation5 + $0x28] sm:$0xff] }
 0x330   : > { %v897_v54 = vsub.f32 %v881_v53, %v865_v30  ;;  %v1200_v34 = vmul.f32 %v2237_v47, %v958_v31  ;;  %v1547_v35 = vpop.f32.mrb[22].mxu1 }
 0x331   : > { %v919_v37 = vmul.f32 1.442695, %v898_v32  ;;  %v1199_v38 = vmul.f32 %v2239_v48, %v957_v33  ;;  %v786_v39 = vadd.f32 %v1547_v35, %v2291_v59  ;;  %v780_v40 = vpop.f32.mrb[23].mxu1 }
 0x332   : > { %v917_v42 = vmul.f32 1.442695, %v897_v54  ;;  %1216 = vst [vmem:[%s2308_s7 + $0x8] sm:$0xff] %v1200_v34  ;;  %v781_v43 = vadd.f32 %v780_v40, %v2291_v59 }
 0x333   : > { %1711 = vpow2.f32 %v919_v37  ;;  %1215 = vst [vmem:[%s2308_s7] sm:$0xff] %v1199_v38  ;;  %v852_v47 = vsub.f32 %v786_v39, %v836_v36  ;;  %v840_v39 = vmul.f32 2.0, %v2267_v2  ;;  %v947_v2 = vld [vmem:[#allocation5 + $0x30] sm:$0xff] }
 0x334   : > { %1713 = vpow2.f32 %v917_v42  ;;  %v851_v48 = vsub.f32 %v781_v43, %v835_v41 }
 0x335   : > { %v1708_v46 = vpop.eup %1707  ;;  %v868_v4 = vmax.f32 %v852_v47, 0.0  ;;  %v839_v47 = vmul.f32 2.0, %v2269_v3 }
 0x336   : > { %v1710_v58 = vpop.eup %1709  ;;  %v867_v49 = vmax.f32 %v851_v48, 0.0  ;;  %v960_v10 = vadd.f32 %v1708_v46, %v944_v57 }
 0x337   : > { %v900_v12 = vsub.f32 %v884_v44, %v868_v4  ;;  %v959_v16 = vadd.f32 %v1710_v58, %v943_v45  ;;  %v948_v45 = vld [vmem:[#allocation5 + $0x38] sm:$0xff] }
 0x338   : > { %v899_v50 = vsub.f32 %v883_v6, %v867_v49  ;;  %v1202_v19 = vmul.f32 %v2241_v51, %v960_v10  ;;  %v1550_v20 = vpop.f32.mrb[24].mxu1  ;;  %v886_v51 = vld [vmem:[#allocation2 + $0x48] sm:$0xff] }
 0x339   : > { %v923_v22 = vmul.f32 1.442695, %v900_v12  ;;  %v1201_v23 = vmul.f32 %v2243_v52, %v959_v16  ;;  %v796_v24 = vadd.f32 %v1550_v20, %v2291_v59  ;;  %v790_v25 = vpop.f32.mrb[25].mxu1  ;;  %v885_v52 = vld [vmem:[#allocation2 + $0x40] sm:$0xff]  ;;  %v842_v20 = vmul.f32 2.0, %v2277_v8 }
 0x33a   : > { %v921_v27 = vmul.f32 1.442695, %v899_v50  ;;  %1218 = vst [vmem:[%s2308_s7 + $0x18] sm:$0xff] %v1202_v19  ;;  %v791_v28 = vadd.f32 %v790_v25, %v2291_v59  ;;  %v841_v25 = vmul.f32 2.0, %v2279_v9  ;;  %v949_v8 = vld [vmem:[#allocation5 + $0x40] sm:$0xff] }
 0x33b   : > { %1715 = vpow2.f32 %v923_v22  ;;  %1217 = vst [vmem:[%s2308_s7 + $0x10] sm:$0xff] %v1201_v23  ;;  %v854_v53 = vsub.f32 %v796_v24, %v838_v21 }
 0x33c   : > { %1717 = vpow2.f32 %v921_v27  ;;  %v853_v30 = vsub.f32 %v791_v28, %v837_v26 }
 0x33d   : > { %v1712_v31 = vpop.eup %1711  ;;  %v870_v32 = vmax.f32 %v854_v53, 0.0  ;;  %v950_v53 = vld [vmem:[#allocation5 + $0x48] sm:$0xff] }
 0x33e   : > { %v1714_v33 = vpop.eup %1713  ;;  %v869_v54 = vmax.f32 %v853_v30, 0.0  ;;  %v962_v34 = vadd.f32 %v1712_v31, %v946_v29 }
 0x33f   : > { %v902_v63 = vsub.f32 %v886_v51, %v870_v32  ;;  %v961_v35 = vadd.f32 %v1714_v33, %v945_v62 }
 0x340   : > { %v901_v36 = vsub.f32 %v885_v52, %v869_v54  ;;  %v1204_v37 = vmul.f32 %v2247_v55, %v962_v34  ;;  %v1553_v38 = vpop.f32.mrb[26].mxu1  ;;  %v888_v55 = vld [vmem:[#allocation2 + $0x58] sm:$0xff] }
 0x341   : > { %v927_v40 = vmul.f32 1.442695, %v902_v63  ;;  %v1203_v41 = vmul.f32 %v2249_v56, %v961_v35  ;;  %v806_v42 = vadd.f32 %v1553_v38, %v2291_v59  ;;  %v800_v43 = vpop.f32.mrb[27].mxu1  ;;  %v887_v56 = vld [vmem:[#allocation2 + $0x50] sm:$0xff]  ;;  %v844_v63 = vmul.f32 2.0, %v2285_v14 }
 0x342   : > { %v925_v57 = vmul.f32 1.442695, %v901_v36  ;;  %1220 = vst [vmem:[%s2308_s7 + $0x28] sm:$0xff] %v1204_v37  ;;  %v801_v44 = vadd.f32 %v800_v43, %v2291_v59  ;;  %v952_v43 = vld [vmem:[#allocation5 + $0x58] sm:$0xff] }
 0x343   : > { %1719 = vpow2.f32 %v927_v40  ;;  %1219 = vst [vmem:[%s2308_s7 + $0x20] sm:$0xff] %v1203_v41  ;;  %v856_v48 = vsub.f32 %v806_v42, %v840_v39  ;;  %v843_v39 = vmul.f32 2.0, %v2287_v15 }
 0x344   : > { %1721 = vpow2.f32 %v925_v57  ;;  %v855_v46 = vsub.f32 %v801_v44, %v839_v47  ;;  %v951_v47 = vld [vmem:[#allocation5 + $0x50] sm:$0xff] }
 0x345   : > { %v1716_v4 = vpop.eup %1715  ;;  %v872_v6 = vmax.f32 %v856_v48, 0.0  ;;  %v891_v44 = vld [vmem:[#allocation2 + $0x70] sm:$0xff] }
 0x346   : > { %v1718_v58 = vpop.eup %1717  ;;  %v871_v49 = vmax.f32 %v855_v46, 0.0  ;;  %v964_v10 = vadd.f32 %v1716_v4, %v948_v45 }
 0x347   : > { %v904_v3 = vsub.f32 %v888_v55, %v872_v6  ;;  %v963_v12 = vadd.f32 %v1718_v58, %v947_v2  ;;  %v954_v58 = vld [vmem:[#allocation5 + $0x68] sm:$0xff] }
 0x348   : > { %v903_v16 = vsub.f32 %v887_v56, %v871_v49  ;;  %v1206_v50 = vmul.f32 %v2255_v60, %v964_v10  ;;  %v1556_v19 = vpop.f32.mrb[28].mxu1  ;;  %v890_v60 = vld [vmem:[#allocation2 + $0x68] sm:$0xff]  ;;  %v953_v49 = vld [vmem:[#allocation5 + $0x60] sm:$0xff] }
 0x349   : > { %v931_v21 = vmul.f32 1.442695, %v904_v3  ;;  %v1205_v22 = vmul.f32 %v2257_v61, %v963_v12  ;;  %v816_v23 = vadd.f32 %v1556_v19, %v2291_v59  ;;  %v810_v24 = vpop.f32.mrb[29].mxu1  ;;  %v889_v61 = vld [vmem:[#allocation2 + $0x60] sm:$0xff]  ;;  %v955_v19 = vld [vmem:[#allocation5 + $0x70] sm:$0xff] }
 0x34a   : > { %v929_v26 = vmul.f32 1.442695, %v903_v16  ;;  %1222 = vst [vmem:[%s2308_s7 + $0x38] sm:$0xff] %v1206_v50  ;;  %v811_v27 = vadd.f32 %v810_v24, %v2291_v59 }
 0x34b   : > { %1723 = vpow2.f32 %v931_v21  ;;  %1221 = vst [vmem:[%s2308_s7 + $0x30] sm:$0xff] %v1205_v22  ;;  %v858_v28 = vsub.f32 %v816_v23, %v842_v20 }
 0x34c   : > { %1725 = vpow2.f32 %v929_v26  ;;  %v857_v29 = vsub.f32 %v811_v27, %v841_v25 }
 0x34d   : > { %v1720_v51 = vpop.eup %1719  ;;  %v874_v30 = vmax.f32 %v858_v28, 0.0 }
 0x34e   : > { %v1722_v62 = vpop.eup %1721  ;;  %v873_v31 = vmax.f32 %v857_v29, 0.0  ;;  %v966_v32 = vadd.f32 %v1720_v51, %v950_v53 }
 0x34f   : > { %v906_v9 = vsub.f32 %v890_v60, %v874_v30  ;;  %v965_v52 = vadd.f32 %v1722_v62, %v949_v8 }
 0x350   : > { %v905_v33 = vsub.f32 %v889_v61, %v873_v31  ;;  %v1208_v54 = vmul.f32 %v2263_v0, %v966_v32  ;;  %v1559_v34 = vpop.f32.mrb[30].mxu1  ;;  %v892_v0 = vld [vmem:[#allocation2 + $0x78] sm:$0xff] }
 0x351   : > { %v935_v35 = vmul.f32 1.442695, %v906_v9  ;;  %v1207_v36 = vmul.f32 %v2265_v1, %v965_v52  ;;  %v826_v37 = vadd.f32 %v1559_v34, %v2291_v59  ;;  %v820_v38 = vpop.f32.mrb[31].mxu1 }
 0x352   : > { %v933_v40 = vmul.f32 1.442695, %v905_v33  ;;  %1224 = vst [vmem:[%s2308_s7 + $0x48] sm:$0xff] %v1208_v54  ;;  %v821_v41 = vadd.f32 %v820_v38, %v2291_v59 }
 0x353   : > { %1727 = vpow2.f32 %v935_v35  ;;  %1223 = vst [vmem:[%s2308_s7 + $0x40] sm:$0xff] %v1207_v36  ;;  %v860_v42 = vsub.f32 %v826_v37, %v844_v63 }
 0x354   : > { %1729 = vpow2.f32 %v933_v40  ;;  %v859_v14 = vsub.f32 %v821_v41, %v843_v39 }
 0x355   : > { %v1724_v1 = vpop.eup %1723  ;;  %v876_v57 = vmax.f32 %v860_v42, 0.0 }
 0x356   : > { %v1726_v48 = vpop.eup %1725  ;;  %v875_v45 = vmax.f32 %v859_v14, 0.0  ;;  %v968_v15 = vadd.f32 %v1724_v1, %v952_v43 }
 0x357   : > { %v908_v55 = vsub.f32 %v892_v0, %v876_v57  ;;  %v967_v46 = vadd.f32 %v1726_v48, %v951_v47 }
 0x358   : > { %v907_v2 = vsub.f32 %v891_v44, %v875_v45  ;;  %v1210_v59 = vmul.f32 %v2272_v5, %v968_v15 }
 0x359   : > { %v939_v4 = vmul.f32 1.442695, %v908_v55  ;;  %v1209_v6 = vmul.f32 %v2275_v7, %v967_v46  ;;  %v956_v7 = vld [vmem:[#allocation5 + $0x78] sm:$0xff] }
 0x35a   : > { %v937_v56 = vmul.f32 1.442695, %v907_v2  ;;  %1226 = vst [vmem:[%s2308_s7 + $0x58] sm:$0xff] %v1210_v59 }
 0x35b   : > { %1731 = vpow2.f32 %v939_v4  ;;  %1225 = vst [vmem:[%s2308_s7 + $0x50] sm:$0xff] %v1209_v6 }
 0x35c   : > { %1733 = vpow2.f32 %v937_v56 }
 0x35d   : > { %v1728_v10 = vpop.eup %1727 }
 0x35e   : > { %v1730_v3 = vpop.eup %1729  ;;  %v970_v12 = vadd.f32 %v1728_v10, %v954_v58 }
 0x35f   : > { %v969_v16 = vadd.f32 %v1730_v3, %v953_v49 }
 0x360   : > { %v1212_v5 = vmul.f32 %v2281_v11, %v970_v12 }
 0x361   : > { %v1211_v50 = vmul.f32 %v2283_v13, %v969_v16 }
 0x362   : > { %1228 = vst [vmem:[%s2308_s7 + $0x68] sm:$0xff] %v1212_v5 }
 0x363   : > { %1227 = vst [vmem:[%s2308_s7 + $0x60] sm:$0xff] %v1211_v50 }
 0x365   : > { %v1732_v20 = vpop.eup %1731 }
 0x366   : > { %v1734_v21 = vpop.eup %1733  ;;  %v972_v22 = vadd.f32 %v1732_v20, %v956_v7 }
 0x367   : > { %v971_v23 = vadd.f32 %v1734_v21, %v955_v19 }
 0x368   : > { %v1214_v24 = vmul.f32 %v2289_v17, %v972_v22 }
 0x369   : > { %v1213_v11 = vmul.f32 %v2293_v18, %v971_v23 }
 0x36a   : > { %1230 = vst [vmem:[%s2308_s7 + $0x78] sm:$0xff] %v1214_v24 }
 0x36b   : > { %1229 = vst [vmem:[%s2308_s7 + $0x70] sm:$0xff] %v1213_v11 }
 0x36c   : > { %1862 = shalt.err (!%p1859_p4)
}
 0x36d   : > { %s1863_s5 = scalar_lea.hbm %s2359_s27, 2048  ;;  %s1867_s29 = scalar_lea.hbm %s2412_s4, 4096 }
 0x36e   : > { %p1864_p10 = scmp.ne.s32.totalorder %s2359_s27, %s1863_s5  ;;  %p1868_p13 = scmp.lt.u32.totalorder %s2359_s27, %s2412_s4 }
 0x36f   : > { %p1869_p6 = scmp.lt.u32.totalorder %s1867_s29, %s1863_s5  ;;  %p1871_p9 = scmp.lt.u32.totalorder %s1863_s5, %s2359_s27 }
 0x370   : > { %p1865_p0 = pnand %p1864_p10, %p2116_p5 }
 0x371   : > { %p1870_p11 = por %p1869_p6, %p1868_p13 }
 0x372   : > { %p1866_p8 = pneg %p1865_p0 }
 0x373   : > { %p1872_p3 = por %p1871_p9, %p1870_p11 }
 0x375   : > { %p1873_p7 = pnand %p1872_p3, %p1866_p8 }
 0x377   : > { %1876 = shalt.err (!%p1873_p7)
}
 0x378   : > { %s1935_s7 = smov 128   ;;  %s1936_s8 = smov 8  }
 0x379   : > { %1632 = dma.vmem_to_hbm [thread:$0]  (%p2116_p5), %s2361_s11, 2048, %s2359_s27, %s1232_s19, %s1935_s7, %s1935_s7, %s1936_s8  }
 0x37a PF: > { %s1260_s26 = sand.u32 1, %s1911_s15   ;;  %p2430_p12 = scmp.ne.s32.totalorder %s2417_s22, 0 }
 0x37b   : > { %p2431_p1 = scmp.ge.s32.totalorder %s1923_s18, 2  ;;  %s1261_s25 = scalar_lea.sflag [#allocation4], %s1260_s26 }
 0x37d   : > { %p1649_p2 = pnand %p2431_p1, %p2430_p12 }
 0x37f   : > { %1906 = dma.done.wait (!%p1649_p2), %s1261_s25, 2048  }
 0x380   : > { %1908 = vsyncadd (!%p1649_p2), %s1261_s25, 4294965248  ;;  %p19_p4 = scmp.ge.s32.totalorder %s2102_s10, 4   ;;  %s2432_s15 = smov %s1915_s16 }
 0x381   : > { %s2433_s16 = smov %s1919_s17  ;;  %s2434_s17 = smov %s2112_s12 }
 0x382   : > { %s2435_s18 = smov %s2102_s10  ;;  %21 = sbr.rel (!%p19_p4) target bundleno = 7 (0x7), region = 94 }
 0x389   :  { %1266 = vsyncpa [#allocation3], 1 }
 0x38a   :  { %1268 = vsyncpa [#allocation3 + $0x1], 1 }
 0x38b   :  { %1269 = vsyncpa [#allocation6], 1 }
 0x38c   :  { %1270 = vsyncpa [#allocation9], 1 }
 0x38d   :  { %1272 = vsyncpa [#allocation9 + $0x1], 1 }
 0x38e   :  { %1273 = vsyncpa [#allocation4], 1 }
 0x38f   :  { %1275 = vsyncpa [#allocation4 + $0x1], 1 }

</bundles_post_ra>
